<compile_context>
chip_gen: v7x
topology: tpu7x:2x2x1
jax: 0.10.0
libtpu: 0.0.40
codegen_flags: <defaults>
</compile_context>

<pallas_src>
import functools

import numpy as np

import jax
import jax.numpy as jnp
from jax.experimental import pallas as pl
from jax.experimental.pallas import tpu as pltpu


# ----------------------------------------------------------------------------
# Fused Pallas kernel: (Cout, K) @ (K, N) conv-matmul + scaled residual add
# ----------------------------------------------------------------------------

def _source_residual_kernel(col_ref, xu_ref, w_ref, bias_ref, o_ref):
    # Standard MXU matmul: LHS (Cout, K=9*Cin), RHS (K, n_block) with n_block lane-dense.
    y = jax.lax.dot_general(
        w_ref[...], col_ref[...],
        dimension_numbers=(((1,), (0,)), ((), ())),
        preferred_element_type=jnp.float32)               # (Cout, n_block)
    # Fused residual: x was pixel-unshuffled into the conv-output channel layout,
    # so the add happens in the same lane-dense (Cout, N) layout.
    o_ref[...] = (y + bias_ref[0] * xu_ref[...]).astype(o_ref.dtype)


def _pick_n_block(n_total, cap=16384):
    """Largest lane-dense block of the N axis that divides n_total and keeps per-step
    VMEM (~(9*Cin + 2*Cout) * n_block * 4 B, double-buffered) a few MB at most."""
    if n_total <= cap:
        return n_total
    nb = cap - (cap % 128)
    while nb >= 128:
        if n_total % nb == 0:
            return nb
        nb -= 128
    return n_total


def fused_conv_residual(col_t, x_u, w_r, scale_bias, *, out_dtype):
    """col_t: (9*Cin, B*H*W) transposed im2col of the edge-padded source.
       x_u:   (Cout, B*H*W) residual, pixel-unshuffled into conv-output channel order.
       w_r:   (Cout, 9*Cin) repacked conv weight.  scale_bias: (1,) f32 -> SMEM."""
    K9, n_total = col_t.shape
    Cout = w_r.shape[0]
    n_block = _pick_n_block(n_total)
    grid = (n_total // n_block,)
    return pl.pallas_call(
        _source_residual_kernel,
        out_shape=jax.ShapeDtypeStruct((Cout, n_total), out_dtype),
        grid=grid,
        in_specs=[
            pl.BlockSpec((K9, n_block), lambda n: (0, n)),       # im2col RHS (lane-dense)
            pl.BlockSpec((Cout, n_block), lambda n: (0, n)),     # residual   (lane-dense)
            pl.BlockSpec((Cout, K9), lambda n: (0, 0)),          # weight: VMEM-resident
            pl.BlockSpec(memory_space=pltpu.MemorySpace.SMEM),   # scale_bias scalar
        ],
        out_specs=pl.BlockSpec((Cout, n_block), lambda n: (0, n)),
        compiler_params=pltpu.CompilerParams(
            dimension_semantics=("parallel",)),                  # v7x: 2 TCs split N blocks
    )(col_t, x_u, w_r, scale_bias)


# ----------------------------------------------------------------------------
# JAX glue (pure layout / data movement: pad, im2col gather, pixel (un)shuffle)
# ----------------------------------------------------------------------------

def pixel_unshuffle_nchw(x, r):
    B, C, H, W = x.shape
    x = x.reshape(B, C, H // r, r, W // r, r)
    x = x.transpose(0, 1, 3, 5, 2, 4)
    return x.reshape(B, C * r * r, H // r, W // r)


def pixel_shuffle_nchw(x, r):
    B, C, H, W = x.shape
    Co = C // (r * r)
    x = x.reshape(B, Co, r, r, H, W)
    x = x.transpose(0, 1, 4, 2, 5, 3)
    return x.reshape(B, Co, H * r, W * r)


# ----------------------------------------------------------------------------
# Forward
# ----------------------------------------------------------------------------

def source_residual_forward(x, src, params, scale_factor):
    """x: (B, 3, H*s, W*s) NCHW residual input; src: (B, 3, H, W) NCHW source."""
    s = scale_factor
    B, Cin, H, W = src.shape
    Cout = 3 * s * s
    n_total = B * H * W

    unpad = (x.shape[2] - H * s) // 2
    assert unpad == 0  # TODO(synk): general unpad path (zero-pad of the shuffled conv output) not implemented

    # Replication pad (channels-first; no NHWC transpose).
    srcp = jnp.pad(src, ((0, 0), (0, 0), (1, 1), (1, 1)), mode="edge")  # (B, Cin, H+2, W+2)

    # Transposed im2col built as layout glue: K = (ky,kx,ci) on sublanes, N = (b,h,w)
    # lane-dense.  Ordering matches the hoisted weight repack (tap-major, Cin-minor).
    taps = [srcp[:, :, ky:ky + H, kx:kx + W] for ky in range(3) for kx in range(3)]
    col_t = jnp.stack(taps, axis=0)                                     # (9, B, Cin, H, W)
    col_t = jnp.transpose(col_t, (0, 2, 1, 3, 4)).reshape(9 * Cin, n_total)

    # Pixel-unshuffle x into the conv-output channel layout so the residual add fuses
    # into the kernel; the single shuffle back happens once at the end.
    x_u = pixel_unshuffle_nchw(x, s) if s > 1 else x                    # (B, Cout, H, W)
    x_u = jnp.transpose(x_u, (1, 0, 2, 3)).reshape(Cout, n_total)       # (Cout, B*H*W)

    out = fused_conv_residual(col_t, x_u, params["w_r"], params["scale_bias"],
                              out_dtype=x.dtype)                        # (Cout, B*H*W)

    out = out.reshape(Cout, B, H, W).transpose(1, 0, 2, 3)              # (B, Cout, H, W)
    return pixel_shuffle_nchw(out, s) if s > 1 else out


# ----------------------------------------------------------------------------
# Parameters (mirrors SourceResidual.nearest_neighbor_init) + XLA reference
# ----------------------------------------------------------------------------

def nearest_neighbor_weight(scale_factor, in_channels=3, k=3):
    """OIHW weight (3*s^2, Cin, k, k), identical to SourceResidual.nearest_neighbor_init."""
    center = (k - 1) // 2
    w = np.zeros((3, in_channels, k, k), np.float32)
    for c in range(3):
        w[c, c, center, center] = 1.0
    s = scale_factor
    if s > 1:
        w = w.transpose(1, 0, 2, 3)                                    # (IN, 3, k, k)
        w = np.repeat(np.repeat(w, s, axis=2), s, axis=3)              # nearest upsample
        IN, O = w.shape[:2]
        w = (w.reshape(IN, O, k, s, k, s).transpose(0, 1, 3, 5, 2, 4)
               .reshape(IN, O * s * s, k, k))                          # pixel_unshuffle
        w = w.transpose(1, 0, 2, 3)                                    # (3*s^2, IN, k, k)
    return w


def init_params(key, scale_factor):
    w_oihw = jnp.asarray(nearest_neighbor_weight(scale_factor))
    # Perturb so the test exercises every conv tap (the NN init only hits the center tap).
    w_oihw = w_oihw + 0.05 * jax.random.normal(key, w_oihw.shape, jnp.float32)
    cout, cin = w_oihw.shape[0], w_oihw.shape[1]
    # Hoisted weight repacking: (Cout, Cin, ky, kx) -> (Cout, ky, kx, Cin) -> (Cout, 9*Cin),
    # matching the wrapper-side im2col ordering (ky outer, kx middle, ci inner).
    w_r = jnp.transpose(w_oihw, (0, 2, 3, 1)).reshape(cout, 9 * cin)
    return dict(
        w_oihw=w_oihw,                                  # kept only for the reference check
        w_r=w_r,
        scale_bias=jnp.full((1,), 0.5, jnp.float32),    # nn.Parameter (zero-init in PyTorch)
    )


def reference_forward(x, src, w_oihw, scale_bias, s):
    """Pure-XLA reference with the exact PyTorch op sequence."""
    srcp = jnp.pad(src, ((0, 0), (0, 0), (1, 1), (1, 1)), mode="edge")
    y = jax.lax.conv_general_dilated(
        srcp, w_oihw, window_strides=(1, 1), padding="VALID",
        dimension_numbers=("NCHW", "OIHW", "NCHW"),
        precision=jax.lax.Precision.HIGHEST)
    if s > 1:
        y = pixel_shuffle_nchw(y, s)
    return y + x * scale_bias[0]


# ----------------------------------------------------------------------------
# Main
# ----------------------------------------------------------------------------

if __name__ == "__main__":
    key = jax.random.PRNGKey(0)
    kw, kx, ks = jax.random.split(key, 3)

    scale_factor = 2
    params = init_params(kw, scale_factor)

    src = jax.random.normal(kx, (2, 3, 16, 16), jnp.float32)   # source image
    x = jax.random.normal(ks, (2, 3, 32, 32), jnp.float32)     # residual input at s*resolution

    fwd = jax.jit(functools.partial(source_residual_forward, scale_factor=scale_factor))
    out = jax.block_until_ready(fwd(x, src, params))

    assert out.shape == (2, 3, 32, 32), out.shape
    assert bool(jnp.all(jnp.isfinite(out)))

    ref = reference_forward(x, src, params["w_oihw"], params["scale_bias"], scale_factor)
    # 5e-2 tolerance is intentional: in-kernel MXU f32 matmul uses default (bf16-pass)
    # precision while the reference uses Precision.HIGHEST (documented per review).
    err = float(jnp.max(jnp.abs(out - ref)))
    assert err < 5e-2, err

    print("KERNEL_OK")
</pallas_src>

<mosaic_0001>
module attributes {stable_mosaic.version = 11 : i64} {
  func.func @_source_residual_kernel(%arg0: i32, %arg1: memref<27x512xf32, #tpu.memory_space<vmem>>, %arg2: memref<12x512xf32, #tpu.memory_space<vmem>>, %arg3: memref<12x27xf32, #tpu.memory_space<vmem>>, %arg4: memref<1xf32, #tpu.memory_space<smem>>, %arg5: memref<12x512xf32, #tpu.memory_space<vmem>>) attributes {dimension_semantics = [#tpu.dimension_semantics<parallel>], iteration_bounds = array<i64: 1>, scalar_prefetch = 0 : i64, scratch_operands = 0 : i64, tpu.core_type = #tpu.core_type<tc>, window_params = [{transform_indices = @transform_0, window_bounds = array<i64: 27, 512>}, {transform_indices = @transform_1, window_bounds = array<i64: 12, 512>}, {pipeline_mode = #tpu.pipeline_mode<synchronous>, transform_indices = @transform_2, window_bounds = array<i64: 12, 27>}, {transform_indices = @transform_3, window_bounds = array<i64: 1>}, {transform_indices = @transform_4, window_bounds = array<i64: 12, 512>}]} {
    %c0 = arith.constant 0 : index
    %c0_0 = arith.constant 0 : index
    %0 = vector.load %arg3[%c0, %c0_0] : memref<12x27xf32, #tpu.memory_space<vmem>>, vector<12x27xf32>
    %c0_1 = arith.constant 0 : index
    %c0_2 = arith.constant 0 : index
    %1 = vector.load %arg1[%c0_1, %c0_2] : memref<27x512xf32, #tpu.memory_space<vmem>>, vector<27x512xf32>
    %cst = arith.constant dense<0.000000e+00> : vector<12x512xf32>
    %2 = tpu.matmul %0, %1, %cst {dimension_numbers = #tpu.dot_dimension_numbers<[1], [0], [0], [1], [0, 0, 1, 1], [], []>} : vector<12x27xf32>, vector<27x512xf32>, vector<12x512xf32> -> vector<12x512xf32>
    %c0_3 = arith.constant 0 : index
    %3 = memref.load %arg4[%c0_3] : memref<1xf32, #tpu.memory_space<smem>>
    %c0_4 = arith.constant 0 : index
    %c0_5 = arith.constant 0 : index
    %4 = vector.load %arg2[%c0_4, %c0_5] : memref<12x512xf32, #tpu.memory_space<vmem>>, vector<12x512xf32>
    %5 = vector.broadcast %3 : f32 to vector<12x512xf32>
    %6 = arith.mulf %5, %4 : vector<12x512xf32>
    %7 = arith.addf %2, %6 : vector<12x512xf32>
    %c0_6 = arith.constant 0 : index
    %c0_7 = arith.constant 0 : index
    %8 = vector.load %arg5[%c0_6, %c0_7] : memref<12x512xf32, #tpu.memory_space<vmem>>, vector<12x512xf32>
    tpu.vector_store %arg5[%c0_6, %c0_7], %7 {strides = array<i32>} : memref<12x512xf32, #tpu.memory_space<vmem>>, vector<12x512xf32>,
    return
  }
  func.func @transform_0(%arg0: i32) -> (i32, i32) {
    %c0_i32 = arith.constant 0 : i32
    %c0_i32_0 = arith.constant 0 : i32
    return %c0_i32, %arg0 : i32, i32
  }
  func.func @transform_1(%arg0: i32) -> (i32, i32) {
    %c0_i32 = arith.constant 0 : i32
    %c0_i32_0 = arith.constant 0 : i32
    return %c0_i32, %arg0 : i32, i32
  }
  func.func @transform_2(%arg0: i32) -> (i32, i32) {
    %c0_i32 = arith.constant 0 : i32
    %c0_i32_0 = arith.constant 0 : i32
    %c0_i32_1 = arith.constant 0 : i32
    return %c0_i32, %c0_i32_0 : i32, i32
  }
  func.func @transform_3(%arg0: i32) -> i32 {
    %c0_i32 = arith.constant 0 : i32
    %c0_i32_0 = arith.constant 0 : i32
    return %c0_i32 : i32
  }
  func.func @transform_4(%arg0: i32) -> (i32, i32) {
    %c0_i32 = arith.constant 0 : i32
    %c0_i32_0 = arith.constant 0 : i32
    return %c0_i32, %arg0 : i32, i32
  }
}

</mosaic_0001>

<bundles_post_ra>
// kernel: source_residual_forward.1
= control target key start
LH: loop header
LB: loop body
LE: loop exit
PB: predicated region body
PF: predicated region fallthrough
CT: control target
= control target key end

     0   :  { %vm61_vm0 = vcmask 1042432   ;;  %v270_v3 = vmov 0.0   ;;  %vm271_vm1 = vmmov 1   ;;  %vm54_vm3 = vcmask 220160   ;;  %s415_s0 = inlined_call_operand.vmem [shape: f32[27,512], index: 0, kind: input, shape index: {}]   ;;  %s416_s2 = inlined_call_operand.vmem [shape: f32[12,27], index: 2, kind: input, shape index: {}]   ;;  %s417_s1 = inlined_call_operand.vmem [shape: f32[12,512], index: 1, kind: input, shape index: {}]   ;;  %s418_s3 = inlined_call_operand.<no memory space> [shape: f32[1], index: 3, kind: input, shape index: {}]   ;;  %s419_s4 = inlined_call_operand.vmem [shape: f32[12,512], index: 4, kind: output, shape index: {}]  }
   0x1   :  { %v21_v0 = vld [vmem:[%s415_s0 + $0x8] sm:$0xff]  ;;  %v23_v2 = vld [vmem:[%s415_s0 + $0x18] sm:$0xff]  ;;  %138 = vmatprep.mubr.f32.mxu0 %v270_v3  ;;  %215 = vmatprep.mubr.f32.mxu1 %v270_v3  ;;  %v20_v6 = vld [vmem:[%s415_s0] sm:$0xff]  ;;  %v45_v29 = vstv %s418_s3 }
   0x2   :  { %v25_v1 = vld [vmem:[%s415_s0 + $0x28] sm:$0xff]  ;;  %v27_v5 = vld [vmem:[%s415_s0 + $0x38] sm:$0xff]  ;;  %v24_v7 = vld [vmem:[%s415_s0 + $0x20] sm:$0xff] }
   0x3   :  { %v248_v4 = vpack.c.bf16 %v25_v1, %v21_v0  ;;  %v258_v8 = vpack.c.bf16 %v27_v5, %v23_v2  ;;  %v250_v9 = vpack.c.bf16 %v24_v7, %v20_v6  ;;  %v22_v10 = vld [vmem:[%s415_s0 + $0x10] sm:$0xff]  ;;  %v29_v12 = vld [vmem:[%s415_s0 + $0x48] sm:$0xff]  ;;  %vm328_vm2 = vmpackc.low %vm61_vm0, %vm271_vm1 }
   0x4   :  { %v26_v11 = vld [vmem:[%s415_s0 + $0x30] sm:$0xff]  ;;  %v33_v14 = vld [vmem:[%s415_s0 + $0x68] sm:$0x7]  ;;  %v31_v16 = vld [vmem:[%s415_s0 + $0x58] sm:$0xff] }
   0x5   :  { %249 = vmatprep.subr.bf16.mxu0 %v248_v4  ;;  %v260_v13 = vpack.c.bf16 %v26_v11, %v22_v10  ;;  %259 = vmatprep.subr.bf16.mxu1 %v258_v8  ;;  %v252_v17 = vpack.c.bf16 %v33_v14, %v29_v12  ;;  %v35_v18 = vld [vmem:[%s415_s0 + $0x78] sm:$0x7]  ;;  %v28_v19 = vld [vmem:[%s415_s0 + $0x40] sm:$0xff]  ;;  %v30_v23 = vld [vmem:[%s415_s0 + $0x50] sm:$0xff] }
   0x6   :  { %251 = vmatpush1.bf16.msra.mxu0 %v250_v9  ;;  %v32_v20 = vld [vmem:[%s415_s0 + $0x60] sm:$0x7]  ;;  %v262_v21 = vpack.c.bf16 %v35_v18, %v31_v16  ;;  %v34_v24 = vld [vmem:[%s415_s0 + $0x70] sm:$0x7]  ;;  %v19_v27 = vld [vmem:[%s416_s2 + $0x8] sm:$0xf] }
   0x7   :  { %261 = vmatpush1.bf16.msra.mxu1 %v260_v13  ;;  %v255_v22 = vpack.c.bf16 %v32_v20, %v28_v19  ;;  %254 = vmatprep.subr.msk.bf16.mxu0 %vm328_vm2, %v252_v17  ;;  %v265_v25 = vpack.c.bf16 %v34_v24, %v30_v23  ;;  %v18_v26 = vld [vmem:[%s416_s2] sm:$0xff]  ;;  %v39_v30 = vld [vmem:[%s417_s1 + $0x10] sm:$0xff]  ;;  %v38_v31 = vld [vmem:[%s417_s1 + $0x8] sm:$0xff] }
   0x8   :  { %264 = vmatprep.subr.msk.bf16.mxu1 %vm328_vm2, %v262_v21  ;;  %v37_v28 = vld [vmem:[%s417_s1] sm:$0xff]  ;;  %v40_v32 = vld [vmem:[%s417_s1 + $0x18] sm:$0xff]  ;;  %v48_v34 = vmul.f32 %v45_v29, %v39_v30  ;;  %v47_v35 = vmul.f32 %v45_v29, %v38_v31  ;;  %v43_v38 = vld [vmem:[%s417_s1 + $0x30] sm:$0xf] }
   0x9   :  { %v46_v33 = vmul.f32 %v45_v29, %v37_v28  ;;  %v41_v36 = vld [vmem:[%s417_s1 + $0x20] sm:$0xf]  ;;  %v49_v37 = vmul.f32 %v45_v29, %v40_v32  ;;  %v42_v39 = vld [vmem:[%s417_s1 + $0x28] sm:$0xf]  ;;  %v44_v41 = vld [vmem:[%s417_s1 + $0x38] sm:$0xf]  ;;  %v52_v49 = vmul.f32 %v45_v29, %v43_v38 }
   0xa   :  { %257 = vmatpush1.bf16.msk.msra.mxu0 %vm328_vm2, %v255_v22  ;;  %v50_v45 = vmul.f32 %v45_v29, %v41_v36  ;;  %v51_v50 = vmul.f32 %v45_v29, %v42_v39  ;;  %v53_v52 = vmul.f32 %v45_v29, %v44_v41 }
   0xb   :  { %267 = vmatpush1.bf16.msk.msra.mxu1 %vm328_vm2, %v265_v25 }
   0xd   :  { %242 = vmatmul.mubr.msk.f32.vlgmr.msra.gmra.mrb[0].mxu0 %vm54_vm3, %v18_v26 }
   0xe   :  { %246 = vmatmul.mubr.msk.f32.vlgmr.msra.gmra.mrb[0].mxu1 %vm54_vm3, %v18_v26  ;;  %144 = vmatprep.mubr.f32.mxu0 %v270_v3 }
   0xf   :  { %221 = vmatprep.mubr.f32.mxu1 %v270_v3 }
  0x11   :  { %243 = vmatmul.mubr.msk.f32.gmra.mrb[2].mxu0 %vm54_vm3, %v19_v27 }
  0x12   :  { %247 = vmatmul.mubr.msk.f32.gmra.mrb[2].mxu1 %vm54_vm3, %v19_v27 }
  0xe0   :  { %v140_v40 = vpop.f32.mrb[0].mxu0 }
  0xe1   :  { %v141_v42 = vadd.f32 %v140_v40, %v46_v33  ;;  %v217_v43 = vpop.f32.mrb[0].mxu1  ;;  %v142_v44 = vpop.f32.mrb[1].mxu0 }
  0xe2   :  { %v218_v46 = vadd.f32 %v217_v43, %v48_v34  ;;  %v143_v47 = vadd.f32 %v142_v44, %v47_v35  ;;  %v219_v48 = vpop.f32.mrb[1].mxu1 }
  0xe3   :  { %228 = vst [vmem:[%s419_s4] sm:$0xff] %v141_v42  ;;  %v220_v51 = vadd.f32 %v219_v48, %v49_v37 }
  0xe4   :  { %230 = vst [vmem:[%s419_s4 + $0x10] sm:$0xff] %v218_v46  ;;  %229 = vst [vmem:[%s419_s4 + $0x8] sm:$0xff] %v143_v47  ;;  %v146_v53 = vpop.f32.mrb[2].mxu0 }
  0xe5   :  { %231 = vst [vmem:[%s419_s4 + $0x18] sm:$0xff] %v220_v51  ;;  %v147_v54 = vadd.f32 %v146_v53, %v50_v45  ;;  %v223_v55 = vpop.f32.mrb[2].mxu1  ;;  %v148_v56 = vpop.f32.mrb[3].mxu0 }
  0xe6   :  { %v224_v57 = vadd.f32 %v223_v55, %v52_v49  ;;  %v149_v58 = vadd.f32 %v148_v56, %v51_v50  ;;  %v225_v59 = vpop.f32.mrb[3].mxu1 }
  0xe7   :  { %232 = vst [vmem:[%s419_s4 + $0x20] sm:$0xf] %v147_v54  ;;  %v226_v60 = vadd.f32 %v225_v59, %v53_v52 }
  0xe8   :  { %234 = vst [vmem:[%s419_s4 + $0x30] sm:$0xf] %v224_v57  ;;  %233 = vst [vmem:[%s419_s4 + $0x28] sm:$0xf] %v149_v58 }
  0xe9   :  { %235 = vst [vmem:[%s419_s4 + $0x38] sm:$0xf] %v226_v60 }

</bundles_post_ra>
